<compile_context>
chip_gen: v7x
topology: tpu7x:2x2x1
jax: 0.10.0
libtpu: 0.0.40
codegen_flags: <defaults>
</compile_context>

<pallas_src>
import functools
import math

import jax
import jax.numpy as jnp
from jax.experimental import pallas as pl
from jax.experimental.pallas import tpu as pltpu

_BYTE_TARGET = 8 << 20        # per-grid-step HBM bytes (inputs + output)
_PALLAS_MIN_ROWS = 512        # below this, plain concatenate (XLA-fused) wins
_MIN_GRID_STEPS = 4           # keep both v7x TensorCores fed via "parallel" axis
_VMEM_CAP_BYTES = 48 << 20    # stay safely under v7x's 64 MiB physical VMEM


def _identity_message_kernel(z_src_ref, z_dst_ref, raw_msg_ref, t_enc_ref, out_ref):
    dt = out_ref.dtype
    # Assemble the whole output tile in registers and emit a single dense
    # full-tile store (instead of four masked partial-column stores).
    out_ref[...] = jnp.concatenate(
        [
            z_src_ref[...].astype(dt),
            z_dst_ref[...].astype(dt),
            raw_msg_ref[...].astype(dt),
            t_enc_ref[...].astype(dt),
        ],
        axis=-1,
    )


def _round_up(x, m):
    return ((x + m - 1) // m) * m


def _round_down(x, m):
    return (x // m) * m


@functools.partial(
    jax.jit, static_argnames=("byte_target", "min_rows_for_pallas")
)
def identity_message(z_src, z_dst, raw_msg, t_enc,
                     *, byte_target=_BYTE_TARGET,
                     min_rows_for_pallas=_PALLAS_MIN_ROWS):
    """Pallas equivalent of IdentityMessage.forward (concat along last axis)."""
    lead = z_src.shape[:-1]
    assert z_dst.shape == z_src.shape, "z_src / z_dst shapes must match"
    assert raw_msg.shape[:-1] == lead and t_enc.shape[:-1] == lead, \
        "all inputs must share leading (row/batch) dims"

    memory_dim = z_src.shape[-1]
    raw_msg_dim = raw_msg.shape[-1]
    time_dim = t_enc.shape[-1]
    out_channels = raw_msg_dim + 2 * memory_dim + time_dim
    out_dtype = jnp.result_type(z_src.dtype, z_dst.dtype, raw_msg.dtype, t_enc.dtype)

    def _fallback(*xs):
        return jnp.concatenate([x.astype(out_dtype) for x in xs], axis=-1)

    # 1-D inputs: torch.cat(dim=-1) is a plain vector concat.
    if z_src.ndim == 1:
        return _fallback(z_src, z_dst, raw_msg, t_enc)

    # Flatten any leading batch dims into a single row axis.
    n = math.prod(lead)
    inputs = [x.reshape((n, x.shape[-1])) for x in (z_src, z_dst, raw_msg, t_enc)]

    # Tiny problems: let XLA fuse a plain concatenate into the consumer — that
    # skips the HBM round trip entirely, which no kernel tuning can match.
    if n < min_rows_for_pallas:
        return _fallback(*inputs).reshape(lead + (out_channels,))

    # --- Row-tile selection (the big lever for this mem-bound copy). -------
    out_itemsize = jnp.dtype(out_dtype).itemsize
    row_in_bytes = sum(x.shape[-1] * x.dtype.itemsize for x in inputs)
    row_out_bytes = out_channels * out_itemsize
    row_bytes = row_in_bytes + row_out_bytes

    # Target ~byte_target of HBM traffic per grid step.
    tm_bytes = max(8, _round_down(byte_target // row_bytes, 8))
    # Keep the grid >= _MIN_GRID_STEPS so both v7x TensorCores get work.
    tm_cores = _round_up(pl.cdiv(n, _MIN_GRID_STEPS), 8)
    tm = max(8, min(tm_bytes, tm_cores, _round_up(n, 8)))
    grid = (pl.cdiv(n, tm),)

    # Raise the scoped-VMEM limit to cover the double-buffered tiles (+headroom),
    # capped below v7x's 64 MiB physical VMEM.
    db_vmem_bytes = 2 * tm * row_bytes
    vmem_limit = int(min(max(db_vmem_bytes + (4 << 20), 16 << 20), _VMEM_CAP_BYTES))

    # Advisory cost: pure bandwidth, no flops.
    total_bytes = sum(x.size * x.dtype.itemsize for x in inputs) + n * row_out_bytes
    cost = pl.CostEstimate(flops=0, transcendentals=0,
                           bytes_accessed=int(total_bytes))

    def row_spec(d):
        return pl.BlockSpec((tm, d), lambda i: (i, 0))

    out_flat = pl.pallas_call(
        _identity_message_kernel,
        out_shape=jax.ShapeDtypeStruct((n, out_channels), out_dtype),
        grid=grid,
        in_specs=[
            row_spec(memory_dim),
            row_spec(memory_dim),
            row_spec(raw_msg_dim),
            row_spec(time_dim),
        ],
        out_specs=row_spec(out_channels),
        compiler_params=pltpu.CompilerParams(
            dimension_semantics=("parallel",),
            vmem_limit_bytes=vmem_limit,
        ),
        cost_estimate=cost,
    )(*inputs)

    return out_flat.reshape(lead + (out_channels,))


def _reference(z_src, z_dst, raw_msg, t_enc):
    dt = jnp.result_type(z_src.dtype, z_dst.dtype, raw_msg.dtype, t_enc.dtype)
    return jnp.concatenate(
        [z_src.astype(dt), z_dst.astype(dt), raw_msg.astype(dt), t_enc.astype(dt)],
        axis=-1,
    )


if __name__ == "__main__":
    # IdentityMessage has no learnable parameters — out_channels is just
    # raw_msg_dim + 2 * memory_dim + time_dim.
    raw_msg_dim = 16
    memory_dim = 32
    time_dim = 16
    out_channels = raw_msg_dim + 2 * memory_dim + time_dim

    key = jax.random.PRNGKey(0)
    k1, k2, k3, k4 = jax.random.split(key, 4)

    # --- Pallas path: n not a multiple of the row tile (exercises the masked
    #     edge block), mixed dtypes (exercises the in-kernel cast). ----------
    n_events = 1111
    z_src = jax.random.normal(k1, (n_events, memory_dim), dtype=jnp.float32)
    z_dst = jax.random.normal(k2, (n_events, memory_dim), dtype=jnp.float32)
    raw_msg = jax.random.normal(k3, (n_events, raw_msg_dim), dtype=jnp.bfloat16)
    t_enc = jax.random.normal(k4, (n_events, time_dim), dtype=jnp.float32)

    out = identity_message(z_src, z_dst, raw_msg, t_enc)
    jax.block_until_ready(out)
    ref = _reference(z_src, z_dst, raw_msg, t_enc)
    assert out.shape == (n_events, out_channels)
    assert out.dtype == ref.dtype
    assert jnp.array_equal(out, ref), "Pallas concat mismatch"

    # --- Batched inputs (leading dim flattened), still Pallas path. ---------
    b, s = 3, 256
    zb1 = jax.random.normal(k1, (b, s, memory_dim), dtype=jnp.float32)
    zb2 = jax.random.normal(k2, (b, s, memory_dim), dtype=jnp.float32)
    rb = jax.random.normal(k3, (b, s, raw_msg_dim), dtype=jnp.float32)
    tb = jax.random.normal(k4, (b, s, time_dim), dtype=jnp.float32)
    out_b = identity_message(zb1, zb2, rb, tb)
    jax.block_until_ready(out_b)
    assert out_b.shape == (b, s, out_channels)
    assert jnp.array_equal(out_b, _reference(zb1, zb2, rb, tb))

    # --- Tiny-N fallback path (pure jnp.concatenate). -----------------------
    n_small = 8
    out_s = identity_message(z_src[:n_small], z_dst[:n_small],
                             raw_msg[:n_small], t_enc[:n_small])
    jax.block_until_ready(out_s)
    assert jnp.array_equal(
        out_s, _reference(z_src[:n_small], z_dst[:n_small],
                          raw_msg[:n_small], t_enc[:n_small]))

    print("KERNEL_OK")
</pallas_src>

<mosaic_0001>
module attributes {stable_mosaic.version = 11 : i64} {
  func.func @_identity_message_kernel(%arg0: i32, %arg1: memref<280x32xf32, #tpu.memory_space<vmem>>, %arg2: memref<280x32xf32, #tpu.memory_space<vmem>>, %arg3: memref<280x16xbf16, #tpu.memory_space<vmem>>, %arg4: memref<280x16xf32, #tpu.memory_space<vmem>>, %arg5: memref<280x96xf32, #tpu.memory_space<vmem>>) attributes {dimension_semantics = [#tpu.dimension_semantics<parallel>], iteration_bounds = array<i64: 4>, scalar_prefetch = 0 : i64, scratch_operands = 0 : i64, tpu.core_type = #tpu.core_type<tc>, window_params = [{transform_indices = @transform_0, window_bounds = array<i64: 280, 32>}, {transform_indices = @transform_1, window_bounds = array<i64: 280, 32>}, {transform_indices = @transform_2, window_bounds = array<i64: 280, 16>}, {transform_indices = @transform_3, window_bounds = array<i64: 280, 16>}, {transform_indices = @transform_4, window_bounds = array<i64: 280, 96>}]} {
    %c0 = arith.constant 0 : index
    %c0_0 = arith.constant 0 : index
    %0 = vector.load %arg1[%c0, %c0_0] : memref<280x32xf32, #tpu.memory_space<vmem>>, vector<280x32xf32>
    %c0_1 = arith.constant 0 : index
    %c0_2 = arith.constant 0 : index
    %1 = vector.load %arg2[%c0_1, %c0_2] : memref<280x32xf32, #tpu.memory_space<vmem>>, vector<280x32xf32>
    %c0_3 = arith.constant 0 : index
    %c0_4 = arith.constant 0 : index
    %2 = vector.load %arg3[%c0_3, %c0_4] : memref<280x16xbf16, #tpu.memory_space<vmem>>, vector<280x16xbf16>
    %3 = arith.extf %2 : vector<280x16xbf16> to vector<280x16xf32>
    %c0_5 = arith.constant 0 : index
    %c0_6 = arith.constant 0 : index
    %4 = vector.load %arg4[%c0_5, %c0_6] : memref<280x16xf32, #tpu.memory_space<vmem>>, vector<280x16xf32>
    %5 = tpu.concatenate %0, %1, %3, %4 in 1 : vector<280x32xf32>, vector<280x32xf32>, vector<280x16xf32>, vector<280x16xf32> -> vector<280x96xf32>
    %c0_7 = arith.constant 0 : index
    %c0_8 = arith.constant 0 : index
    %6 = vector.load %arg5[%c0_7, %c0_8] : memref<280x96xf32, #tpu.memory_space<vmem>>, vector<280x96xf32>
    tpu.vector_store %arg5[%c0_7, %c0_8], %5 {strides = array<i32>} : memref<280x96xf32, #tpu.memory_space<vmem>>, vector<280x96xf32>,
    return
  }
  func.func @transform_0(%arg0: i32) -> (i32, i32) {
    %c0_i32 = arith.constant 0 : i32
    %c0_i32_0 = arith.constant 0 : i32
    return %arg0, %c0_i32 : i32, i32
  }
  func.func @transform_1(%arg0: i32) -> (i32, i32) {
    %c0_i32 = arith.constant 0 : i32
    %c0_i32_0 = arith.constant 0 : i32
    return %arg0, %c0_i32 : i32, i32
  }
  func.func @transform_2(%arg0: i32) -> (i32, i32) {
    %c0_i32 = arith.constant 0 : i32
    %c0_i32_0 = arith.constant 0 : i32
    return %arg0, %c0_i32 : i32, i32
  }
  func.func @transform_3(%arg0: i32) -> (i32, i32) {
    %c0_i32 = arith.constant 0 : i32
    %c0_i32_0 = arith.constant 0 : i32
    return %arg0, %c0_i32 : i32, i32
  }
  func.func @transform_4(%arg0: i32) -> (i32, i32) {
    %c0_i32 = arith.constant 0 : i32
    %c0_i32_0 = arith.constant 0 : i32
    return %arg0, %c0_i32 : i32, i32
  }
}

</mosaic_0001>

<bundles_post_ra>
// kernel: identity_message.1
= control target key start
LH: loop header
LB: loop body
LE: loop exit
PB: predicated region body
PF: predicated region fallthrough
CT: control target
= control target key end

     0   :  { %s1876_s15 = smov 0   ;;  %s1878_s16 = smov 0   ;;  %s2629_s0 = inlined_call_operand.vmem [shape: f32[1111,32], index: 0, kind: input, shape index: {}]   ;;  %s2630_s1 = inlined_call_operand.vmem [shape: f32[1111,32], index: 1, kind: input, shape index: {}]   ;;  %s2631_s2 = inlined_call_operand.vmem [shape: bf16[1111,16], index: 2, kind: input, shape index: {}]   ;;  %s2632_s3 = inlined_call_operand.vmem [shape: f32[1111,16], index: 3, kind: input, shape index: {}]   ;;  %s2633_s4 = inlined_call_operand.vmem [shape: f32[1111,96], index: 4, kind: output, shape index: {}]  }
   0x1   :  { %s1880_s17 = smov 0  }
   0x2 LB: > { %s1889_s18 = sadd.s32 4294967295, %s1814_s17   ;;  %s1891_s19 = sadd.s32 1, %s1814_s17   ;;  %s1814_s17 = sphi %s1880_s17, %s2644_s17   ;;  %s1810_s16 = sphi %s1878_s16, %s2643_s16   ;;  %s1806_s15 = sphi %s1876_s15, %s2642_s15  }
   0x3   : > { %s122_s20 = ssub.s32 %s1814_s17, %s1891_s19  ;;  %s125_s21 = sadd.s32 1, %s1810_s16 }
   0x4   : > { %p123_p0 = scmp.eq.s32.totalorder %s122_s20, 0  ;;  %p135_p1 = scmp.ne.s32.totalorder %s1810_s16, %s1806_s15 }
   0x5   : > { %p136_p2 = scmp.eq.s32.totalorder %s1889_s18, 3  ;;  %p1476_p3 = scmp.ge.s32.totalorder %s1814_s17, 1 }
   0x6   : > { %s1899_s22 = scalar_select %p123_p0, %s1810_s16, %s125_s21  }
   0x7   : > { %p1901_p4 = por %p136_p2, %p135_p1  ;;  %p228_p5 = scmp.lt.s32.totalorder %s1814_s17, 5 }
   0x9   : > { %p229_p6 = pnand %p1476_p3, %p228_p5 }
   0xb   : > { %232 = sbr.rel (%p229_p6) target bundleno = 386 (0x182), region = 36 }
  0x12   : > { %s1906_s24 = smul.u32 35, %s1889_s18  ;;  %s1848_s30 = smov 32   ;;  %vm940_vm0 = vcmask 261120   ;;  %vm976_vm1 = vcmask 523264   ;;  %vm1012_vm2 = vcmask 654336   ;;  %vm1048_vm3 = vcmask 785408  }
  0x13   : > { %s1849_s9 = smov 64   ;;  %s1850_s13 = smov 80  }
  0x14   : > { %p289_p7 = scmp.lt.s32.totalorder %s1906_s24, 138  ;;  %s281_s21 = sand.u32 1, %s1806_s15  }
  0x15   : > { %s1493_s27 = smul.u32 (%p1901_p4), 280, %s1889_s18 }
  0x16   : > { %s1910_s25 = scalar_select %p289_p7, %s1906_s24, 138 }
  0x18   : > { %s1913_s26 = sshll.u32 %s1910_s25, 3  ;;  %s1479_s5 = sshll.u32 %s1910_s25, 2 }
  0x19   : > { %s1919_s29 = scalar_lea.vmem %s2630_s1, %s1913_s26  ;;  %s1983_s8 = scalar_lea.vmem %s2631_s2, %s1479_s5 }
  0x1a   : > { %v382_v0 = vld [vmem:[%s1919_s29 + $0x10] sm:$0xff]  ;;  %v380_v1 = vld [vmem:[%s1919_s29] sm:$0xff]  ;;  %v383_v2 = vld [vmem:[%s1919_s29 + $0x18] sm:$0xff]  ;;  %s2034_s12 = scalar_lea.vmem %s2632_s3, %s1913_s26  ;;  %s2051_s20 = scalar_lea.vmem %s2629_s0, %s1913_s26 }
  0x1b   : > { %559 = vrot.lane.b32.xlu1 %v382_v0, %s1848_s30  ;;  %555 = vrot.lane.b32.xlu0 %v380_v1, %s1848_s30  ;;  %v381_v3 = vld [vmem:[%s1919_s29 + $0x8] sm:$0xff]  ;;  %v384_v5 = vld [vmem:[%s1919_s29 + $0x20] sm:$0xff]  ;;  %s1578_s25 = smul.u32 280, %s281_s21  ;;  %s1092_s26 = ssub.s32 (%p1901_p4), 139, %s1906_s24 }
  0x1c   : > { %v385_v4 = vld [vmem:[%s1919_s29 + $0x28] sm:$0xff]  ;;  %v387_v6 = vld [vmem:[%s1919_s29 + $0x38] sm:$0xff]  ;;  %v386_v7 = vld [vmem:[%s1919_s29 + $0x30] sm:$0xff]  ;;  %p1093_p8 = scmp.lt.s32.totalorder (%p1901_p4), %s1092_s26, 35 }
  0x1d   : > { %v389_v8 = vld [vmem:[%s1919_s29 + $0x48] sm:$0xff]  ;;  %v388_v9 = vld [vmem:[%s1919_s29 + $0x40] sm:$0xff]  ;;  %v391_v10 = vld [vmem:[%s1919_s29 + $0x58] sm:$0xff]  ;;  %s2294_s15 = scalar_lea.vmem [#allocation2], %s1578_s25  }
  0x1e   : > { %v390_v11 = vld [vmem:[%s1919_s29 + $0x50] sm:$0xff]  ;;  %v393_v12 = vld [vmem:[%s1919_s29 + $0x68] sm:$0xff]  ;;  %v392_v13 = vld [vmem:[%s1919_s29 + $0x60] sm:$0xff] }
  0x1f   : > { %561 = vrot.lane.b32.xlu1 %v383_v2, %s1848_s30  ;;  %557 = vrot.lane.b32.xlu0 %v381_v3, %s1848_s30  ;;  %v395_v14 = vld [vmem:[%s1919_s29 + $0x78] sm:$0xff]  ;;  %v394_v15 = vld [vmem:[%s1919_s29 + $0x70] sm:$0xff] }
  0x20   : > { %v397_v16 = vld [vmem:[%s1919_s29 + $0x88] sm:$0xff]  ;;  %v396_v17 = vld [vmem:[%s1919_s29 + $0x80] sm:$0xff]  ;;  %v399_v18 = vld [vmem:[%s1919_s29 + $0x98] sm:$0xff] }
  0x21   : > { %v398_v19 = vld [vmem:[%s1919_s29 + $0x90] sm:$0xff]  ;;  %v401_v20 = vld [vmem:[%s1919_s29 + $0xa8] sm:$0xff]  ;;  %v400_v21 = vld [vmem:[%s1919_s29 + $0xa0] sm:$0xff] }
  0x22   : > { %v403_v22 = vld [vmem:[%s1919_s29 + $0xb8] sm:$0xff]  ;;  %v402_v23 = vld [vmem:[%s1919_s29 + $0xb0] sm:$0xff]  ;;  %v405_v24 = vld [vmem:[%s1919_s29 + $0xc8] sm:$0xff] }
  0x23   : > { %565 = vrot.lane.b32.xlu1 %v385_v4, %s1848_s30  ;;  %563 = vrot.lane.b32.xlu0 %v384_v5, %s1848_s30  ;;  %v404_v25 = vld [vmem:[%s1919_s29 + $0xc0] sm:$0xff]  ;;  %v407_v26 = vld [vmem:[%s1919_s29 + $0xd8] sm:$0xff] }
  0x24   : > { %v406_v27 = vld [vmem:[%s1919_s29 + $0xd0] sm:$0xff]  ;;  %v409_v28 = vld [vmem:[%s1919_s29 + $0xe8] sm:$0xff]  ;;  %v408_v29 = vld [vmem:[%s1919_s29 + $0xe0] sm:$0xff] }
  0x25   : > { %v411_v30 = vld [vmem:[%s1919_s29 + $0xf8] sm:$0xff]  ;;  %v410_v31 = vld [vmem:[%s1919_s29 + $0xf0] sm:$0xff]  ;;  %v1495_v32 = vld [vmem:[%s1983_s8] sm:$0xff]  }
  0x26   : > { %v1496_v33 = vunpack.c.l.bf16 %v1495_v32  ;;  %v1497_v34 = vunpack.c.h.bf16 %v1495_v32  ;;  %v1563_v35 = vld [vmem:[%s1983_s8 + $0x10] sm:$0xff]   ;;  %v413_v36 = vld [vmem:[%s1919_s29 + $0x108] sm:$0xff]  ;;  %v412_v37 = vld [vmem:[%s1919_s29 + $0x100] sm:$0xff] }
  0x27   : > { %569 = vrot.lane.b32.xlu1 %v387_v6, %s1848_s30  ;;  %567 = vrot.lane.b32.xlu0 %v386_v7, %s1848_s30  ;;  %v1562_v38 = vld [vmem:[%s1983_s8 + $0x8] sm:$0xff]   ;;  %v1504_v39 = vunpack.c.l.bf16 %v1563_v35  ;;  %v1505_v41 = vunpack.c.h.bf16 %v1563_v35  ;;  %v1565_v44 = vld [vmem:[%s1983_s8 + $0x20] sm:$0xff]  }
  0x28   : > { %v1671_v40 = vpack.i.bf16 %v1497_v34, %v1496_v33  ;;  %v1500_v42 = vunpack.c.l.bf16 %v1562_v38  ;;  %v1501_v43 = vunpack.c.h.bf16 %v1562_v38  ;;  %v414_v45 = vld [vmem:[%s1919_s29 + $0x110] sm:$0xff]  ;;  %v1564_v46 = vld [vmem:[%s1983_s8 + $0x18] sm:$0xff]   ;;  %v1512_v47 = vunpack.c.l.bf16 %v1565_v44  ;;  %v1566_v54 = vld [vmem:[%s1983_s8 + $0x28] sm:$0xff]  }
  0x29   : > { %v1513_v48 = vunpack.c.h.bf16 %v1565_v44  ;;  %v1681_v49 = vpack.i.bf16 %v1505_v41, %v1504_v39  ;;  %v1508_v51 = vunpack.c.l.bf16 %v1564_v46  ;;  %v1509_v52 = vunpack.c.h.bf16 %v1564_v46  ;;  %v1567_v53 = vld [vmem:[%s1983_s8 + $0x30] sm:$0xff]   ;;  %v1569_v61 = vld [vmem:[%s1983_s8 + $0x40] sm:$0xff]   ;;  %v1568_v62 = vld [vmem:[%s1983_s8 + $0x38] sm:$0xff]  }
  0x2a   : > { %v1676_v50 = vpack.i.bf16 %v1501_v43, %v1500_v42  ;;  %v1520_v56 = vunpack.c.l.bf16 %v1567_v53  ;;  %v1521_v58 = vunpack.c.h.bf16 %v1567_v53  ;;  %v1516_v59 = vunpack.c.l.bf16 %v1566_v54  ;;  %v1571_v5 = vld [vmem:[%s1983_s8 + $0x50] sm:$0xff]   ;;  %v1570_v6 = vld [vmem:[%s1983_s8 + $0x48] sm:$0xff]   ;;  %v485_v41 = vld [vmem:[%s2034_s12] sm:$0xff] }
  0x2b   : > { %573 = vrot.lane.b32.xlu1 %v389_v8, %s1848_s30  ;;  %571 = vrot.lane.b32.xlu0 %v388_v9, %s1848_s30  ;;  %v1691_v55 = vpack.i.bf16 %v1513_v48, %v1512_v47  ;;  %v1686_v57 = vpack.i.bf16 %v1509_v52, %v1508_v51  ;;  %v1517_v60 = vunpack.c.h.bf16 %v1566_v54  ;;  %v1528_v63 = vunpack.c.l.bf16 %v1569_v61  ;;  %v449_v39 = vld [vmem:[%s1983_s8 + $0x88] sm:$0xf]  ;;  %v487_v42 = vld [vmem:[%s2034_s12 + $0x10] sm:$0xff] }
  0x2c   : > { %v1529_v0 = vunpack.c.h.bf16 %v1569_v61  ;;  %v1701_v1 = vpack.i.bf16 %v1521_v58, %v1520_v56  ;;  %v1524_v3 = vunpack.c.l.bf16 %v1568_v62  ;;  %v1525_v4 = vunpack.c.h.bf16 %v1568_v62  ;;  %v486_v43 = vld [vmem:[%s2034_s12 + $0x8] sm:$0xff]  ;;  %v489_v44 = vld [vmem:[%s2034_s12 + $0x20] sm:$0xff]  ;;  %v347_v46 = vld [vmem:[%s2051_s20 + $0x10] sm:$0xff] }
  0x2d   : > { %v1696_v2 = vpack.i.bf16 %v1517_v60, %v1516_v59  ;;  %v1536_v8 = vunpack.c.l.bf16 %v1571_v5  ;;  %v345_v47 = vld [vmem:[%s2051_s20] sm:$0xff]  ;;  %v491_v48 = vld [vmem:[%s2034_s12 + $0x30] sm:$0xff]  ;;  %v348_v54 = vld [vmem:[%s2051_s20 + $0x18] sm:$0xff] }
  0x2e   : > { %v1711_v7 = vpack.i.bf16 %v1529_v0, %v1528_v63  ;;  %v1706_v9 = vpack.i.bf16 %v1525_v4, %v1524_v3  ;;  %v493_v56 = vld [vmem:[%s2034_s12 + $0x40] sm:$0xff]  ;;  %v350_v62 = vld [vmem:[%s2051_s20 + $0x28] sm:$0xff]  ;;  %v495_v0 = vld [vmem:[%s2034_s12 + $0x50] sm:$0xff] }
  0x2f   : > { %577 = vrot.lane.b32.xlu1 %v391_v10, %s1848_s30  ;;  %575 = vrot.lane.b32.xlu0 %v390_v11, %s1848_s30  ;;  %v1537_v10 = vunpack.c.h.bf16 %v1571_v5  ;;  %v1532_v11 = vunpack.c.l.bf16 %v1570_v6  ;;  %v349_v63 = vld [vmem:[%s2051_s20 + $0x20] sm:$0xff] }
  0x33   : > { %581 = vrot.lane.b32.xlu1 %v393_v12, %s1848_s30  ;;  %579 = vrot.lane.b32.xlu0 %v392_v13, %s1848_s30  ;;  %v1533_v12 = vunpack.c.h.bf16 %v1570_v6  ;;  %v1573_v13 = vld [vmem:[%s1983_s8 + $0x60] sm:$0xff]   ;;  %v352_v6 = vld [vmem:[%s2051_s20 + $0x38] sm:$0xff] }
  0x37   : > { %585 = vrot.lane.b32.xlu1 %v395_v14, %s1848_s30  ;;  %583 = vrot.lane.b32.xlu0 %v394_v15, %s1848_s30  ;;  %v1572_v14 = vld [vmem:[%s1983_s8 + $0x58] sm:$0xff]   ;;  %v1544_v15 = vunpack.c.l.bf16 %v1573_v13 }
  0x3b   : > { %589 = vrot.lane.b32.xlu1 %v397_v16, %s1848_s30  ;;  %587 = vrot.lane.b32.xlu0 %v396_v17, %s1848_s30  ;;  %v1545_v16 = vunpack.c.h.bf16 %v1573_v13  ;;  %v1721_v17 = vpack.i.bf16 %v1537_v10, %v1536_v8  ;;  %v497_v8 = vld [vmem:[%s2034_s12 + $0x60] sm:$0xff] }
  0x3f   : > { %593 = vrot.lane.b32.xlu1 %v399_v18, %s1848_s30  ;;  %591 = vrot.lane.b32.xlu0 %v398_v19, %s1848_s30  ;;  %v1716_v18 = vpack.i.bf16 %v1533_v12, %v1532_v11  ;;  %v1540_v19 = vunpack.c.l.bf16 %v1572_v14 }
  0x43   : > { %597 = vrot.lane.b32.xlu1 %v401_v20, %s1848_s30  ;;  %595 = vrot.lane.b32.xlu0 %v400_v21, %s1848_s30  ;;  %v1541_v20 = vunpack.c.h.bf16 %v1572_v14  ;;  %v1575_v21 = vld [vmem:[%s1983_s8 + $0x70] sm:$0xff]   ;;  %v354_v14 = vld [vmem:[%s2051_s20 + $0x48] sm:$0xff] }
  0x47   : > { %601 = vrot.lane.b32.xlu1 %v403_v22, %s1848_s30  ;;  %599 = vrot.lane.b32.xlu0 %v402_v23, %s1848_s30  ;;  %v1574_v22 = vld [vmem:[%s1983_s8 + $0x68] sm:$0xff]   ;;  %v1731_v23 = vpack.i.bf16 %v1545_v16, %v1544_v15  ;;  %v353_v15 = vld [vmem:[%s2051_s20 + $0x40] sm:$0xff] }
  0x48   : > { %v499_v16 = vld [vmem:[%s2034_s12 + $0x70] sm:$0xff] }
  0x4b   : > { %605 = vrot.lane.b32.xlu1 %v405_v24, %s1848_s30  ;;  %603 = vrot.lane.b32.xlu0 %v404_v25, %s1848_s30  ;;  %v1552_v24 = vunpack.c.l.bf16 %v1575_v21  ;;  %v1726_v25 = vpack.i.bf16 %v1541_v20, %v1540_v19 }
  0x4f   : > { %609 = vrot.lane.b32.xlu1 %v407_v26, %s1848_s30  ;;  %607 = vrot.lane.b32.xlu0 %v406_v27, %s1848_s30  ;;  %v1553_v26 = vunpack.c.h.bf16 %v1575_v21  ;;  %v1548_v27 = vunpack.c.l.bf16 %v1574_v22 }
  0x51   : > { %v1741_v33 = vpack.i.bf16 %v1553_v26, %v1552_v24  ;;  %v501_v24 = vld [vmem:[%s2034_s12 + $0x80] sm:$0xff] }
  0x53   : > { %613 = vrot.lane.b32.xlu1 %v409_v28, %s1848_s30  ;;  %611 = vrot.lane.b32.xlu0 %v408_v29, %s1848_s30  ;;  %v1549_v28 = vunpack.c.h.bf16 %v1574_v22  ;;  %v1577_v29 = vld [vmem:[%s1983_s8 + $0x80] sm:$0xff]   ;;  %v356_v22 = vld [vmem:[%s2051_s20 + $0x58] sm:$0xff] }
  0x54   : > { %v1561_v32 = vunpack.c.h.bf16 %v1577_v29 }
  0x55   : > { %v1736_v34 = vpack.i.bf16 %v1549_v28, %v1548_v27 }
  0x57   : > { %617 = vrot.lane.b32.xlu1 %v411_v30, %s1848_s30  ;;  %615 = vrot.lane.b32.xlu0 %v410_v31, %s1848_s30  ;;  %v1576_v30 = vld [vmem:[%s1983_s8 + $0x78] sm:$0xff]   ;;  %v1560_v31 = vunpack.c.l.bf16 %v1577_v29 }
  0x58   : > { %v1556_v35 = vunpack.c.l.bf16 %v1576_v30 }
  0x5b   : > { %621 = vrot.lane.b32.xlu1 %v413_v36, %s1848_s30  ;;  %619 = vrot.lane.b32.xlu0 %v412_v37, %s1848_s30  ;;  %v1557_v36 = vunpack.c.h.bf16 %v1576_v30  ;;  %v1751_v37 = vpack.i.bf16 %v1561_v32, %v1560_v31  ;;  %v358_v30 = vld [vmem:[%s2051_s20 + $0x68] sm:$0xff]  ;;  %v357_v31 = vld [vmem:[%s2051_s20 + $0x60] sm:$0xff] }
  0x5c   : > { %v503_v32 = vld [vmem:[%s2034_s12 + $0x90] sm:$0xff] }
  0x5d   : > { %v1746_v38 = vpack.i.bf16 %v1557_v36, %v1556_v35 }
  0x5f   : > { %1672 = vrot.lane.b32.xlu1 %v1671_v40, %s1849_s9  ;;  %623 = vrot.lane.b32.xlu0 %v414_v45, %s1848_s30  ;;  %v484_v40 = vunpack.c.l.bf16 %v449_v39  ;;  %v488_v45 = vld [vmem:[%s2034_s12 + $0x18] sm:$0xff]  ;;  %v359_v39 = vld [vmem:[%s2051_s20 + $0x70] sm:$0xff]  ;;  %s2496_s30 = scalar_lea.vmem (%p1901_p4), %s2633_s4, %s1493_s27  }
  0x63   : > { %1682 = vrot.lane.b32.xlu1 %v1681_v49, %s1849_s9  ;;  %1677 = vrot.lane.b32.xlu0 %v1676_v50, %s1849_s9  ;;  %v490_v49 = vld [vmem:[%s2034_s12 + $0x28] sm:$0xff] }
  0x67   : > { %1692 = vrot.lane.b32.xlu1 %v1691_v55, %s1849_s9  ;;  %1687 = vrot.lane.b32.xlu0 %v1686_v57, %s1849_s9  ;;  %v346_v55 = vld [vmem:[%s2051_s20 + $0x8] sm:$0xff]  ;;  %v492_v57 = vld [vmem:[%s2034_s12 + $0x38] sm:$0xff] }
  0x6b   : > { %1702 = vrot.lane.b32.xlu1 %v1701_v1, %s1849_s9  ;;  %1697 = vrot.lane.b32.xlu0 %v1696_v2, %s1849_s9  ;;  %v494_v1 = vld [vmem:[%s2034_s12 + $0x48] sm:$0xff] }
  0x6f   : > { %1712 = vrot.lane.b32.xlu1 %v1711_v7, %s1849_s9  ;;  %1707 = vrot.lane.b32.xlu0 %v1706_v9, %s1849_s9  ;;  %v351_v7 = vld [vmem:[%s2051_s20 + $0x30] sm:$0xff]  ;;  %v496_v9 = vld [vmem:[%s2034_s12 + $0x58] sm:$0xff] }
  0x73   : > { %1722 = vrot.lane.b32.xlu1 %v1721_v17, %s1849_s9  ;;  %1717 = vrot.lane.b32.xlu0 %v1716_v18, %s1849_s9  ;;  %v498_v17 = vld [vmem:[%s2034_s12 + $0x68] sm:$0xff] }
  0x77   : > { %1732 = vrot.lane.b32.xlu1 %v1731_v23, %s1849_s9  ;;  %1727 = vrot.lane.b32.xlu0 %v1726_v25, %s1849_s9  ;;  %v355_v23 = vld [vmem:[%s2051_s20 + $0x50] sm:$0xff]  ;;  %v500_v25 = vld [vmem:[%s2034_s12 + $0x78] sm:$0xff] }
  0x7b   : > { %1742 = vrot.lane.b32.xlu1 %v1741_v33, %s1849_s9  ;;  %1737 = vrot.lane.b32.xlu0 %v1736_v34, %s1849_s9  ;;  %v502_v33 = vld [vmem:[%s2034_s12 + $0x88] sm:$0xff] }
  0x7f   : > { %1752 = vrot.lane.b32.xlu1 %v1751_v37, %s1849_s9  ;;  %1747 = vrot.lane.b32.xlu0 %v1746_v38, %s1849_s9  ;;  %v360_v38 = vld [vmem:[%s2051_s20 + $0x78] sm:$0xff] }
  0x83   : > { %835 = vrot.lane.b32.xlu1 %v485_v41, %s1850_s13  ;;  %763 = vrot.lane.b32.xlu0 %v484_v40, %s1849_s9  ;;  %v505_v40 = vld [vmem:[%s2034_s12 + $0xa0] sm:$0xff]  ;;  %v504_v41 = vld [vmem:[%s2034_s12 + $0x98] sm:$0xff] }
  0x87   : > { %839 = vrot.lane.b32.xlu1 %v487_v42, %s1850_s13  ;;  %837 = vrot.lane.b32.xlu0 %v486_v43, %s1850_s13 }
  0x8b   : > { %843 = vrot.lane.b32.xlu1 %v489_v44, %s1850_s13  ;;  %841 = vrot.lane.b32.xlu0 %v488_v45, %s1850_s13 }
  0x8d   : > { %v560_v50 = vpop.permute.xlu1 %559  ;;  %v556_v51 = vpop.permute.xlu0 %555 }
  0x8e   : > { %v2060_v52 = vsel %vm940_vm0, %v347_v46, %v560_v50  ;;  %v2063_v53 = vsel %vm940_vm0, %v345_v47, %v556_v51  ;;  %v362_v46 = vld [vmem:[%s2051_s20 + $0x88] sm:$0xff]  ;;  %v361_v47 = vld [vmem:[%s2051_s20 + $0x80] sm:$0xff] }
  0x8f   : > { %847 = vrot.lane.b32.xlu1 %v491_v48, %s1850_s13  ;;  %845 = vrot.lane.b32.xlu0 %v490_v49, %s1850_s13  ;;  %v507_v48 = vld [vmem:[%s2034_s12 + $0xb0] sm:$0xff]  ;;  %v506_v49 = vld [vmem:[%s2034_s12 + $0xa8] sm:$0xff] }
  0x91   : > { %v562_v58 = vpop.permute.xlu1 %561  ;;  %v558_v59 = vpop.permute.xlu0 %557 }
  0x92   : > { %v2072_v60 = vsel %vm940_vm0, %v348_v54, %v562_v58  ;;  %v2075_v61 = vsel %vm940_vm0, %v346_v55, %v558_v59  ;;  %v509_v58 = vld [vmem:[%s2034_s12 + $0xc0] sm:$0xff]  ;;  %v508_v59 = vld [vmem:[%s2034_s12 + $0xb8] sm:$0xff] }
  0x93   : > { %851 = vrot.lane.b32.xlu1 %v493_v56, %s1850_s13  ;;  %849 = vrot.lane.b32.xlu0 %v492_v57, %s1850_s13  ;;  %v364_v56 = vld [vmem:[%s2051_s20 + $0x98] sm:$0xff]  ;;  %v363_v57 = vld [vmem:[%s2051_s20 + $0x90] sm:$0xff] }
  0x95   : > { %v566_v2 = vpop.permute.xlu1 %565  ;;  %v564_v3 = vpop.permute.xlu0 %563 }
  0x96   : > { %v2084_v4 = vsel %vm940_vm0, %v350_v62, %v566_v2  ;;  %v2087_v5 = vsel %vm940_vm0, %v349_v63, %v564_v3  ;;  %v366_v2 = vld [vmem:[%s2051_s20 + $0xa8] sm:$0xff]  ;;  %v365_v3 = vld [vmem:[%s2051_s20 + $0xa0] sm:$0xff] }
  0x97   : > { %855 = vrot.lane.b32.xlu1 %v495_v0, %s1850_s13  ;;  %853 = vrot.lane.b32.xlu0 %v494_v1, %s1850_s13 }
  0x99   : > { %v570_v10 = vpop.permute.xlu1 %569  ;;  %v568_v11 = vpop.permute.xlu0 %567 }
  0x9a   : > { %v2096_v12 = vsel %vm940_vm0, %v352_v6, %v570_v10  ;;  %v2099_v13 = vsel %vm940_vm0, %v351_v7, %v568_v11  ;;  %v511_v6 = vld [vmem:[%s2034_s12 + $0xd0] sm:$0xff]  ;;  %v510_v7 = vld [vmem:[%s2034_s12 + $0xc8] sm:$0xff] }
  0x9b   : > { %859 = vrot.lane.b32.xlu1 %v497_v8, %s1850_s13  ;;  %857 = vrot.lane.b32.xlu0 %v496_v9, %s1850_s13 }
  0x9d   : > { %v574_v18 = vpop.permute.xlu1 %573  ;;  %v572_v19 = vpop.permute.xlu0 %571 }
  0x9e   : > { %v2108_v20 = vsel %vm940_vm0, %v354_v14, %v574_v18  ;;  %v2111_v21 = vsel %vm940_vm0, %v353_v15, %v572_v19  ;;  %v368_v14 = vld [vmem:[%s2051_s20 + $0xb8] sm:$0xff]  ;;  %v367_v15 = vld [vmem:[%s2051_s20 + $0xb0] sm:$0xff] }
  0x9f   : > { %863 = vrot.lane.b32.xlu1 %v499_v16, %s1850_s13  ;;  %861 = vrot.lane.b32.xlu0 %v498_v17, %s1850_s13  ;;  %v513_v16 = vld [vmem:[%s2034_s12 + $0xe0] sm:$0xff]  ;;  %v512_v17 = vld [vmem:[%s2034_s12 + $0xd8] sm:$0xff] }
  0xa1   : > { %v578_v26 = vpop.permute.xlu1 %577  ;;  %v576_v27 = vpop.permute.xlu0 %575 }
  0xa2   : > { %v2120_v28 = vsel %vm940_vm0, %v356_v22, %v578_v26  ;;  %v2123_v29 = vsel %vm940_vm0, %v355_v23, %v576_v27  ;;  %v515_v26 = vld [vmem:[%s2034_s12 + $0xf0] sm:$0xff]  ;;  %v514_v27 = vld [vmem:[%s2034_s12 + $0xe8] sm:$0xff] }
  0xa3   : > { %867 = vrot.lane.b32.xlu1 %v501_v24, %s1850_s13  ;;  %865 = vrot.lane.b32.xlu0 %v500_v25, %s1850_s13  ;;  %v370_v24 = vld [vmem:[%s2051_s20 + $0xc8] sm:$0xff]  ;;  %v369_v25 = vld [vmem:[%s2051_s20 + $0xc0] sm:$0xff] }
  0xa5   : > { %v582_v34 = vpop.permute.xlu1 %581  ;;  %v580_v35 = vpop.permute.xlu0 %579 }
  0xa6   : > { %v2132_v36 = vsel %vm940_vm0, %v358_v30, %v582_v34  ;;  %v2135_v37 = vsel %vm940_vm0, %v357_v31, %v580_v35  ;;  %v372_v34 = vld [vmem:[%s2051_s20 + $0xd8] sm:$0xff]  ;;  %v371_v35 = vld [vmem:[%s2051_s20 + $0xd0] sm:$0xff] }
  0xa7   : > { %871 = vrot.lane.b32.xlu1 %v503_v32, %s1850_s13  ;;  %869 = vrot.lane.b32.xlu0 %v502_v33, %s1850_s13 }
  0xa9   : > { %v586_v42 = vpop.permute.xlu1 %585  ;;  %v584_v43 = vpop.permute.xlu0 %583 }
  0xaa   : > { %v2144_v44 = vsel %vm940_vm0, %v360_v38, %v586_v42  ;;  %v2147_v45 = vsel %vm940_vm0, %v359_v39, %v584_v43  ;;  %v517_v38 = vld [vmem:[%s2034_s12 + $0x100] sm:$0xff]  ;;  %v516_v39 = vld [vmem:[%s2034_s12 + $0xf8] sm:$0xff] }
  0xab   : > { %875 = vrot.lane.b32.xlu1 %v505_v40, %s1850_s13  ;;  %873 = vrot.lane.b32.xlu0 %v504_v41, %s1850_s13 }
  0xad   : > { %v590_v50 = vpop.permute.xlu1 %589  ;;  %v588_v51 = vpop.permute.xlu0 %587 }
  0xae   : > { %v2156_v54 = vsel %vm940_vm0, %v362_v46, %v590_v50  ;;  %v2159_v55 = vsel %vm940_vm0, %v361_v47, %v588_v51  ;;  %v374_v46 = vld [vmem:[%s2051_s20 + $0xe8] sm:$0xff]  ;;  %v373_v47 = vld [vmem:[%s2051_s20 + $0xe0] sm:$0xff] }
  0xaf   : > { %879 = vrot.lane.b32.xlu1 %v507_v48, %s1850_s13  ;;  %877 = vrot.lane.b32.xlu0 %v506_v49, %s1850_s13  ;;  %v519_v48 = vld [vmem:[%s2034_s12 + $0x110] sm:$0xff]  ;;  %v518_v49 = vld [vmem:[%s2034_s12 + $0x108] sm:$0xff] }
  0xb1   : > { %v594_v62 = vpop.permute.xlu1 %593  ;;  %v592_v63 = vpop.permute.xlu0 %591 }
  0xb2   : > { %v2168_v0 = vsel %vm940_vm0, %v364_v56, %v594_v62  ;;  %v2171_v1 = vsel %vm940_vm0, %v363_v57, %v592_v63 }
  0xb3   : > { %883 = vrot.lane.b32.xlu1 %v509_v58, %s1850_s13  ;;  %881 = vrot.lane.b32.xlu0 %v508_v59, %s1850_s13  ;;  %v376_v58 = vld [vmem:[%s2051_s20 + $0xf8] sm:$0xff]  ;;  %v375_v59 = vld [vmem:[%s2051_s20 + $0xf0] sm:$0xff] }
  0xb5   : > { %v598_v8 = vpop.permute.xlu1 %597  ;;  %v596_v9 = vpop.permute.xlu0 %595 }
  0xb6   : > { %v2180_v10 = vsel %vm940_vm0, %v366_v2, %v598_v8  ;;  %v2183_v11 = vsel %vm940_vm0, %v365_v3, %v596_v9 }
  0xb7   : > { %887 = vrot.lane.b32.xlu1 %v511_v6, %s1850_s13  ;;  %885 = vrot.lane.b32.xlu0 %v510_v7, %s1850_s13  ;;  %v378_v6 = vld [vmem:[%s2051_s20 + $0x108] sm:$0xff]  ;;  %v377_v7 = vld [vmem:[%s2051_s20 + $0x100] sm:$0xff] }
  0xb9   : > { %v602_v18 = vpop.permute.xlu1 %601  ;;  %v600_v19 = vpop.permute.xlu0 %599 }
  0xba   : > { %v2192_v22 = vsel %vm940_vm0, %v368_v14, %v602_v18  ;;  %v2195_v23 = vsel %vm940_vm0, %v367_v15, %v600_v19 }
  0xbb   : > { %891 = vrot.lane.b32.xlu1 %v513_v16, %s1850_s13  ;;  %889 = vrot.lane.b32.xlu0 %v512_v17, %s1850_s13  ;;  %v379_v16 = vld [vmem:[%s2051_s20 + $0x110] sm:$0xff] }
  0xbd   : > { %v606_v30 = vpop.permute.xlu1 %605  ;;  %v604_v31 = vpop.permute.xlu0 %603 }
  0xbe   : > { %v2204_v32 = vsel %vm940_vm0, %v370_v24, %v606_v30  ;;  %v2207_v33 = vsel %vm940_vm0, %v369_v25, %v604_v31 }
  0xbf   : > { %895 = vrot.lane.b32.xlu1 %v515_v26, %s1850_s13  ;;  %893 = vrot.lane.b32.xlu0 %v514_v27, %s1850_s13 }
  0xc1   : > { %v610_v40 = vpop.permute.xlu1 %609  ;;  %v608_v41 = vpop.permute.xlu0 %607 }
  0xc2   : > { %v2216_v42 = vsel %vm940_vm0, %v372_v34, %v610_v40  ;;  %v2219_v43 = vsel %vm940_vm0, %v371_v35, %v608_v41 }
  0xc3   : > { %899 = vrot.lane.b32.xlu1 %v517_v38, %s1850_s13  ;;  %897 = vrot.lane.b32.xlu0 %v516_v39, %s1850_s13 }
  0xc5   : > { %v614_v50 = vpop.permute.xlu1 %613  ;;  %v612_v51 = vpop.permute.xlu0 %611 }
  0xc6   : > { %v970_v56 = vsel %vm940_vm0, %v374_v46, %v614_v50  ;;  %v2229_v57 = vsel %vm940_vm0, %v373_v47, %v612_v51 }
  0xc7   : > { %903 = vrot.lane.b32.xlu1 %v519_v48, %s1850_s13  ;;  %901 = vrot.lane.b32.xlu0 %v518_v49, %s1850_s13 }
  0xc9   : > { %v618_v62 = vpop.permute.xlu1 %617  ;;  %v616_v63 = vpop.permute.xlu0 %615 }
  0xca   : > { %v972_v2 = vsel %vm940_vm0, %v376_v58, %v618_v62  ;;  %v2237_v3 = vsel %vm940_vm0, %v375_v59, %v616_v63 }
  0xcd   : > { %v622_v8 = vpop.permute.xlu1 %621  ;;  %v620_v9 = vpop.permute.xlu0 %619 }
  0xce   : > { %v974_v14 = vsel %vm940_vm0, %v378_v6, %v622_v8  ;;  %v973_v15 = vsel %vm940_vm0, %v377_v7, %v620_v9 }
  0xd1   : > { %v1673_v17 = vpop.permute.xlu1 %1672  ;;  %v624_v18 = vpop.permute.xlu0 %623 }
  0xd2   : > { %v975_v19 = vsel %vm940_vm0, %v379_v16, %v624_v18  ;;  %v1674_v50 = vunpack.i.l.bf16 %v1673_v17 }
  0xd4   : > { %v977_v18 = vsel %vm976_vm1, %v2063_v53, %v1674_v50 }
  0xd5   : > { %v2245_v24 = vpop.permute.xlu1 %1682  ;;  %v1678_v25 = vpop.permute.xlu0 %1677 }
  0xd6   : > { %v1679_v9 = vunpack.i.l.bf16 %v1678_v25 }
  0xd8   : > { %v979_v53 = vsel %vm976_vm1, %v2060_v52, %v1679_v9 }
  0xd9   : > { %v2247_v26 = vpop.permute.xlu1 %1692  ;;  %v2249_v27 = vpop.permute.xlu0 %1687 }
  0xdd   : > { %v2251_v30 = vpop.permute.xlu1 %1702  ;;  %v2253_v31 = vpop.permute.xlu0 %1697 }
  0xe1   : > { %v2255_v34 = vpop.permute.xlu1 %1712  ;;  %v2257_v35 = vpop.permute.xlu0 %1707 }
  0xe5   : > { %v2259_v38 = vpop.permute.xlu1 %1722  ;;  %v2261_v39 = vpop.permute.xlu0 %1717 }
  0xe9   : > { %v2263_v40 = vpop.permute.xlu1 %1732  ;;  %v2265_v41 = vpop.permute.xlu0 %1727 }
  0xed   : > { %v2267_v46 = vpop.permute.xlu1 %1742  ;;  %v2269_v47 = vpop.permute.xlu0 %1737 }
  0xee   : > { %v1745_v48 = vunpack.i.h.bf16 %v2267_v46 }
  0xf0   : > { %v2274_v49 = vsel %vm976_vm1, %v970_v56, %v1745_v48  ;;  %v1675_v56 = vunpack.i.h.bf16 %v1673_v17 }
  0xf1   : > { %2635 = vst [vmem:[#allocation3_spill] sm:$0xff] %v2274_v49  ;;  %v1753_v51 = vpop.permute.xlu1 %1752  ;;  %v2276_v58 = vpop.permute.xlu0 %1747 }
  0xf2   : > { %v1755_v59 = vunpack.i.h.bf16 %v1753_v51  ;;  %v1754_v62 = vunpack.i.l.bf16 %v1753_v51  ;;  %v1750_v63 = vunpack.i.h.bf16 %v2276_v58 }
  0xf4   : > { %v2280_v6 = vsel %vm976_vm1, %v973_v15, %v1754_v62  ;;  %v2283_v7 = vsel %vm976_vm1, %v972_v2, %v1750_v63  ;;  %v2286_v8 = vsel %vm976_vm1, %v974_v14, %v1755_v59  ;;  %v1684_v2 = vunpack.i.l.bf16 %v2245_v24 }
  0xf5   : > { %v836_v16 = vpop.permute.xlu1 %835  ;;  %v764_v48 = vpop.permute.xlu0 %763  ;;  %v1680_v14 = vunpack.i.h.bf16 %v1678_v25  ;;  %v1685_v25 = vunpack.i.h.bf16 %v2245_v24  ;;  %v1689_v62 = vunpack.i.l.bf16 %v2249_v27  ;;  %v1694_v24 = vunpack.i.l.bf16 %v2247_v26 }
  0xf6   : > { %v1013_v51 = vsel %vm1012_vm2, %v977_v18, %v836_v16  ;;  %v2292_v49 = vsel %vm976_vm1, %v975_v19, %v764_v48  ;;  %v978_v19 = vsel %vm976_vm1, %v2075_v61, %v1675_v56  ;;  %v981_v52 = vsel %vm976_vm1, %v2087_v5, %v1684_v2 }
  0xf7   : > { %1049 = vst.msk [vmem:[%s2294_s15] sm:$0xff] %vm1048_vm3, %v1013_v51  ;;  %v980_v61 = vsel %vm976_vm1, %v2072_v60, %v1680_v14  ;;  %v1690_v18 = vunpack.i.h.bf16 %v2249_v27  ;;  %v983_v5 = vsel %vm976_vm1, %v2099_v13, %v1689_v62  ;;  %v982_v60 = vsel %vm976_vm1, %v2084_v4, %v1685_v25 }
  0xf8   : > { %v1695_v27 = vunpack.i.h.bf16 %v2247_v26  ;;  %v985_v13 = vsel %vm976_vm1, %v2111_v21, %v1694_v24  ;;  %v1704_v26 = vunpack.i.l.bf16 %v2251_v30 }
  0xf9   : > { %v840_v15 = vpop.permute.xlu1 %839  ;;  %v838_v17 = vpop.permute.xlu0 %837  ;;  %v984_v4 = vsel %vm976_vm1, %v2096_v12, %v1690_v18  ;;  %v1710_v18 = vunpack.i.h.bf16 %v2257_v35 }
  0xfa   : > { %v1015_v50 = vsel %vm1012_vm2, %v979_v53, %v840_v15  ;;  %v1014_v59 = vsel %vm1012_vm2, %v978_v19, %v838_v17  ;;  %v1699_v15 = vunpack.i.l.bf16 %v2253_v31  ;;  %v986_v12 = vsel %vm976_vm1, %v2108_v20, %v1695_v27 }
  0xfb   : > { %1051 = vst.msk [vmem:[%s2294_s15 + $0x10] sm:$0xff] %vm1048_vm3, %v1015_v50  ;;  %1050 = vst.msk [vmem:[%s2294_s15 + $0x8] sm:$0xff] %vm1048_vm3, %v1014_v59  ;;  %v1700_v59 = vunpack.i.h.bf16 %v2253_v31  ;;  %v1705_v31 = vunpack.i.h.bf16 %v2251_v30  ;;  %v1714_v30 = vunpack.i.l.bf16 %v2255_v34 }
  0xfc   : > { %v987_v21 = vsel %vm976_vm1, %v2123_v29, %v1699_v15  ;;  %v989_v29 = vsel %vm976_vm1, %v2135_v37, %v1704_v26  ;;  %v1729_v26 = vunpack.i.l.bf16 %v2265_v41 }
  0xfd   : > { %v844_v63 = vpop.permute.xlu1 %843  ;;  %v842_v9 = vpop.permute.xlu0 %841  ;;  %v988_v20 = vsel %vm976_vm1, %v2120_v28, %v1700_v59  ;;  %v990_v28 = vsel %vm976_vm1, %v2132_v36, %v1705_v31  ;;  %v992_v36 = vsel %vm976_vm1, %v2144_v44, %v1710_v18 }
  0xfe   : > { %v1017_v56 = vsel %vm1012_vm2, %v981_v52, %v844_v63  ;;  %v1016_v16 = vsel %vm1012_vm2, %v980_v61, %v842_v9  ;;  %v1709_v9 = vunpack.i.l.bf16 %v2257_v35  ;;  %v1715_v35 = vunpack.i.h.bf16 %v2255_v34 }
  0xff   : > { %1053 = vst.msk [vmem:[%s2294_s15 + $0x20] sm:$0xff] %vm1048_vm3, %v1017_v56  ;;  %1052 = vst.msk [vmem:[%s2294_s15 + $0x18] sm:$0xff] %vm1048_vm3, %v1016_v16  ;;  %v1724_v34 = vunpack.i.l.bf16 %v2259_v38 }
 0x100   : > { %v991_v37 = vsel %vm976_vm1, %v2147_v45, %v1709_v9  ;;  %v993_v45 = vsel %vm976_vm1, %v2159_v55, %v1714_v30  ;;  %v994_v44 = vsel %vm976_vm1, %v2156_v54, %v1715_v35 }
 0x101   : > { %v848_v48 = vpop.permute.xlu1 %847  ;;  %v846_v51 = vpop.permute.xlu0 %845 }
 0x102   : > { %v1019_v2 = vsel %vm1012_vm2, %v983_v5, %v848_v48  ;;  %v1018_v14 = vsel %vm1012_vm2, %v982_v60, %v846_v51 }
 0x103   : > { %1055 = vst.msk [vmem:[%s2294_s15 + $0x30] sm:$0xff] %vm1048_vm3, %v1019_v2  ;;  %1054 = vst.msk [vmem:[%s2294_s15 + $0x28] sm:$0xff] %vm1048_vm3, %v1018_v14  ;;  %v1719_v2 = vunpack.i.l.bf16 %v2261_v39 }
 0x105   : > { %v852_v53 = vpop.permute.xlu1 %851  ;;  %v850_v17 = vpop.permute.xlu0 %849  ;;  %v995_v55 = vsel %vm976_vm1, %v2171_v1, %v1719_v2  ;;  %v997_v1 = vsel %vm976_vm1, %v2183_v11, %v1724_v34  ;;  %v999_v11 = vsel %vm976_vm1, %v2195_v23, %v1729_v26 }
 0x106   : > { %v1021_v19 = vsel %vm1012_vm2, %v985_v13, %v852_v53  ;;  %v1020_v50 = vsel %vm1012_vm2, %v984_v4, %v850_v17  ;;  %v1720_v13 = vunpack.i.h.bf16 %v2261_v39  ;;  %v1725_v39 = vunpack.i.h.bf16 %v2259_v38 }
 0x107   : > { %1057 = vst.msk [vmem:[%s2294_s15 + $0x40] sm:$0xff] %vm1048_vm3, %v1021_v19  ;;  %1056 = vst.msk [vmem:[%s2294_s15 + $0x38] sm:$0xff] %vm1048_vm3, %v1020_v50  ;;  %v1734_v38 = vunpack.i.l.bf16 %v2263_v40 }
 0x108   : > { %v996_v54 = vsel %vm976_vm1, %v2168_v0, %v1720_v13  ;;  %v998_v0 = vsel %vm976_vm1, %v2180_v10, %v1725_v39 }
 0x109   : > { %v856_v25 = vpop.permute.xlu1 %855  ;;  %v854_v62 = vpop.permute.xlu0 %853  ;;  %v1001_v23 = vsel %vm976_vm1, %v2207_v33, %v1734_v38 }
 0x10a   : > { %v1023_v63 = vsel %vm1012_vm2, %v987_v21, %v856_v25  ;;  %v1022_v52 = vsel %vm1012_vm2, %v986_v12, %v854_v62  ;;  %v1730_v12 = vunpack.i.h.bf16 %v2265_v41  ;;  %v1735_v41 = vunpack.i.h.bf16 %v2263_v40 }
 0x10b   : > { %1059 = vst.msk [vmem:[%s2294_s15 + $0x50] sm:$0xff] %vm1048_vm3, %v1023_v63  ;;  %1058 = vst.msk [vmem:[%s2294_s15 + $0x48] sm:$0xff] %vm1048_vm3, %v1022_v52  ;;  %v1744_v40 = vunpack.i.l.bf16 %v2267_v46  ;;  %v1749_v46 = vunpack.i.l.bf16 %v2276_v58 }
 0x10c   : > { %v1000_v10 = vsel %vm976_vm1, %v2192_v22, %v1730_v12  ;;  %v1002_v22 = vsel %vm976_vm1, %v2204_v32, %v1735_v41 }
 0x10d   : > { %v860_v61 = vpop.permute.xlu1 %859  ;;  %v858_v56 = vpop.permute.xlu0 %857  ;;  %v1007_v58 = vsel %vm976_vm1, %v2237_v3, %v1749_v46 }
 0x10e   : > { %v1025_v16 = vsel %vm1012_vm2, %v989_v29, %v860_v61  ;;  %v1024_v24 = vsel %vm1012_vm2, %v988_v20, %v858_v56  ;;  %v1739_v61 = vunpack.i.l.bf16 %v2269_v47 }
 0x10f   : > { %1061 = vst.msk [vmem:[%s2294_s15 + $0x60] sm:$0xff] %vm1048_vm3, %v1025_v16  ;;  %1060 = vst.msk [vmem:[%s2294_s15 + $0x58] sm:$0xff] %vm1048_vm3, %v1024_v24  ;;  %v1740_v24 = vunpack.i.h.bf16 %v2269_v47 }
 0x110   : > { %v1003_v33 = vsel %vm976_vm1, %v2219_v43, %v1739_v61  ;;  %v1005_v43 = vsel %vm976_vm1, %v2229_v57, %v1744_v40 }
 0x111   : > { %v864_v48 = vpop.permute.xlu1 %863  ;;  %v862_v5 = vpop.permute.xlu0 %861  ;;  %v1004_v32 = vsel %vm976_vm1, %v2216_v42, %v1740_v24  ;;  %v2636_v42 = vld [vmem:[#allocation3_spill] sm:$0xff] }
 0x112   : > { %v1027_v51 = vsel %vm1012_vm2, %v991_v37, %v864_v48  ;;  %v1026_v60 = vsel %vm1012_vm2, %v990_v28, %v862_v5 }
 0x113   : > { %1063 = vst.msk [vmem:[%s2294_s15 + $0x70] sm:$0xff] %vm1048_vm3, %v1027_v51  ;;  %1062 = vst.msk [vmem:[%s2294_s15 + $0x68] sm:$0xff] %vm1048_vm3, %v1026_v60 }
 0x115   : > { %v868_v14 = vpop.permute.xlu1 %867  ;;  %v866_v27 = vpop.permute.xlu0 %865 }
 0x116   : > { %v1029_v15 = vsel %vm1012_vm2, %v993_v45, %v868_v14  ;;  %v1028_v53 = vsel %vm1012_vm2, %v992_v36, %v866_v27 }
 0x117   : > { %1065 = vst.msk [vmem:[%s2294_s15 + $0x80] sm:$0xff] %vm1048_vm3, %v1029_v15  ;;  %1064 = vst.msk [vmem:[%s2294_s15 + $0x78] sm:$0xff] %vm1048_vm3, %v1028_v53 }
 0x119   : > { %v872_v17 = vpop.permute.xlu1 %871  ;;  %v870_v4 = vpop.permute.xlu0 %869 }
 0x11a   : > { %v1031_v19 = vsel %vm1012_vm2, %v995_v55, %v872_v17  ;;  %v1030_v50 = vsel %vm1012_vm2, %v994_v44, %v870_v4 }
 0x11b   : > { %1067 = vst.msk [vmem:[%s2294_s15 + $0x90] sm:$0xff] %vm1048_vm3, %v1031_v19  ;;  %1066 = vst.msk [vmem:[%s2294_s15 + $0x88] sm:$0xff] %vm1048_vm3, %v1030_v50 }
 0x11d   : > { %v876_v59 = vpop.permute.xlu1 %875  ;;  %v874_v25 = vpop.permute.xlu0 %873 }
 0x11e   : > { %v1033_v21 = vsel %vm1012_vm2, %v997_v1, %v876_v59  ;;  %v1032_v62 = vsel %vm1012_vm2, %v996_v54, %v874_v25 }
 0x11f   : > { %1069 = vst.msk [vmem:[%s2294_s15 + $0xa0] sm:$0xff] %vm1048_vm3, %v1033_v21  ;;  %1068 = vst.msk [vmem:[%s2294_s15 + $0x98] sm:$0xff] %vm1048_vm3, %v1032_v62 }
 0x121   : > { %v880_v63 = vpop.permute.xlu1 %879  ;;  %v878_v52 = vpop.permute.xlu0 %877 }
 0x122   : > { %v1035_v31 = vsel %vm1012_vm2, %v999_v11, %v880_v63  ;;  %v1034_v9 = vsel %vm1012_vm2, %v998_v0, %v878_v52 }
 0x123   : > { %1071 = vst.msk [vmem:[%s2294_s15 + $0xb0] sm:$0xff] %vm1048_vm3, %v1035_v31  ;;  %1070 = vst.msk [vmem:[%s2294_s15 + $0xa8] sm:$0xff] %vm1048_vm3, %v1034_v9 }
 0x125   : > { %v884_v29 = vpop.permute.xlu1 %883  ;;  %v882_v56 = vpop.permute.xlu0 %881 }
 0x126   : > { %v1037_v20 = vsel %vm1012_vm2, %v1001_v23, %v884_v29  ;;  %v1036_v16 = vsel %vm1012_vm2, %v1000_v10, %v882_v56 }
 0x127   : > { %1073 = vst.msk [vmem:[%s2294_s15 + $0xc0] sm:$0xff] %vm1048_vm3, %v1037_v20  ;;  %1072 = vst.msk [vmem:[%s2294_s15 + $0xb8] sm:$0xff] %vm1048_vm3, %v1036_v16 }
 0x129   : > { %v888_v30 = vpop.permute.xlu1 %887  ;;  %v886_v18 = vpop.permute.xlu0 %885 }
 0x12a   : > { %v1039_v48 = vsel %vm1012_vm2, %v1003_v33, %v888_v30  ;;  %v1038_v37 = vsel %vm1012_vm2, %v1002_v22, %v886_v18 }
 0x12b   : > { %1075 = vst.msk [vmem:[%s2294_s15 + $0xd0] sm:$0xff] %vm1048_vm3, %v1039_v48  ;;  %1074 = vst.msk [vmem:[%s2294_s15 + $0xc8] sm:$0xff] %vm1048_vm3, %v1038_v37 }
 0x12d   : > { %v892_v47 = vpop.permute.xlu1 %891  ;;  %v890_v5 = vpop.permute.xlu0 %889 }
 0x12e   : > { %v1041_v28 = vsel %vm1012_vm2, %v1005_v43, %v892_v47  ;;  %v1040_v51 = vsel %vm1012_vm2, %v1004_v32, %v890_v5 }
 0x12f   : > { %1077 = vst.msk [vmem:[%s2294_s15 + $0xe0] sm:$0xff] %vm1048_vm3, %v1041_v28  ;;  %1076 = vst.msk [vmem:[%s2294_s15 + $0xd8] sm:$0xff] %vm1048_vm3, %v1040_v51 }
 0x131   : > { %v896_v60 = vpop.permute.xlu1 %895  ;;  %v894_v57 = vpop.permute.xlu0 %893 }
 0x132   : > { %v1043_v35 = vsel %vm1012_vm2, %v1007_v58, %v896_v60  ;;  %v1042_v2 = vsel %vm1012_vm2, %v2636_v42, %v894_v57 }
 0x133   : > { %1079 = vst.msk [vmem:[%s2294_s15 + $0xf0] sm:$0xff] %vm1048_vm3, %v1043_v35  ;;  %1078 = vst.msk [vmem:[%s2294_s15 + $0xe8] sm:$0xff] %vm1048_vm3, %v1042_v2 }
 0x135   : > { %v900_v14 = vpop.permute.xlu1 %899  ;;  %v898_v45 = vpop.permute.xlu0 %897  ;;  %1090 = sbr.rel (!%p1901_p4) target bundleno = 386 (0x182), region = 40 }
 0x136   : > { %v1045_v27 = vsel %vm1012_vm2, %v2280_v6, %v900_v14  ;;  %v1044_v3 = vsel %vm1012_vm2, %v2283_v7, %v898_v45 }
 0x137   : > { %1081 = vst.msk [vmem:[%s2294_s15 + $0x100] sm:$0xff] %vm1048_vm3, %v1045_v27  ;;  %1080 = vst.msk [vmem:[%s2294_s15 + $0xf8] sm:$0xff] %vm1048_vm3, %v1044_v3 }
 0x139   : > { %v904_v36 = vpop.permute.xlu1 %903  ;;  %v902_v15 = vpop.permute.xlu0 %901 }
 0x13a   : > { %v1047_v53 = vsel %vm1012_vm2, %v2292_v49, %v904_v36  ;;  %v1046_v34 = vsel %vm1012_vm2, %v2286_v8, %v902_v15 }
 0x13b   : > { %1083 = vst.msk [vmem:[%s2294_s15 + $0x110] sm:$0xff] %vm1048_vm3, %v1047_v53  ;;  %1082 = vst.msk [vmem:[%s2294_s15 + $0x108] sm:$0xff] %vm1048_vm3, %v1046_v34 }
 0x13c   : > { %s2646_s26 = smov (!%p1093_p8, %s1092_s26), 35 }
 0x13d   : > { %s1481_s5 = sshll.u32 %s2646_s26, 7 }
 0x13e   : > { %p1484_p9 = scmp.eq.s32.totalorder %s1481_s5, 0 }
 0x13f   : > { %1756 = sdivrem.u32 (!%p1484_p9), %s2646_s26, 35 }
 0x140   : > { %1101 = sbr.rel (%p1484_p9) target bundleno = 386 (0x182), region = 44 }
 0x148   : > { %s2502_s23 = spop.drf %1756 }
 0x149   : > { %p1485_p10 = scmp.le.s32.totalorder %s2502_s23, 0 }
 0x14a   : > { %s2637_s18 = smov (!%p1485_p10), %s2496_s30  ;;  %s2638_s24 = smov (!%p1485_p10), %s2294_s15 }
 0x14b   : > { %1411 = sbr.rel (%p1485_p10) target bundleno = 357 (0x165), region = 129  ;;  %s2511_s6 = smov (!%p1485_p10), 0  }
 0x14c   : > { %s2513_s7 = smov (!%p1485_p10), 0  }
 0x152 LB: >> { %v1233_v49 = vld [vmem:[%s1822_s24] sm:$0xff]  ;;  %v1235_v6 = vld [vmem:[%s1822_s24 + $0x8] sm:$0xff]  ;;  %v1237_v7 = vld [vmem:[%s1822_s24 + $0x10] sm:$0xff]  ;;  %s1303_s8 = sadd.s32 1, %s1826_s6  ;;  %s1227_s7 = sadd.s32 1, %s1830_s7   ;;  %s1830_s7 = sphi %s2513_s7, %s1227_s7   ;;  %s1826_s6 = sphi %s2511_s6, %s2641_s6   ;;  %s1822_s24 = sphi %s2638_s24, %s2640_s24   ;;  %s1818_s18 = sphi %s2637_s18, %s2639_s18  }
 0x153   : >> { %1234 = vst [vmem:[%s1818_s18] sm:$0xff] %v1233_v49  ;;  %1236 = vst [vmem:[%s1818_s18 + $0x8] sm:$0xff] %v1235_v6  ;;  %v1239_v8 = vld [vmem:[%s1822_s24 + $0x18] sm:$0xff]  ;;  %v1241_v13 = vld [vmem:[%s1822_s24 + $0x20] sm:$0xff]  ;;  %p1304_p11 = scmp.ge.s32.totalorder %s1303_s8, %s2502_s23  ;;  %p1226_p12 = scmp.ge.s32.totalorder %s1227_s7, %s2502_s23 }
 0x154   : >> { %1238 = vst [vmem:[%s1818_s18 + $0x10] sm:$0xff] %v1237_v7  ;;  %v1243_v17 = vld [vmem:[%s1822_s24 + $0x28] sm:$0xff]  ;;  %1240 = vst [vmem:[%s1818_s18 + $0x18] sm:$0xff] %v1239_v8  ;;  %v1245_v55 = vld [vmem:[%s1822_s24 + $0x30] sm:$0xff] }
 0x155   : >> { %1242 = vst [vmem:[%s1818_s18 + $0x20] sm:$0xff] %v1241_v13  ;;  %1244 = vst [vmem:[%s1818_s18 + $0x28] sm:$0xff] %v1243_v17  ;;  %v1247_v4 = vld [vmem:[%s1822_s24 + $0x38] sm:$0xff]  ;;  %v1249_v44 = vld [vmem:[%s1822_s24 + $0x40] sm:$0xff]  ;;  %s2648_s8 = smov (%p1304_p11, %s1303_s8), 0 }
 0x156   : >> { %1246 = vst [vmem:[%s1818_s18 + $0x30] sm:$0xff] %v1245_v55  ;;  %1248 = vst [vmem:[%s1818_s18 + $0x38] sm:$0xff] %v1247_v4  ;;  %v1251_v19 = vld [vmem:[%s1822_s24 + $0x48] sm:$0xff]  ;;  %v1253_v50 = vld [vmem:[%s1822_s24 + $0x50] sm:$0xff]  ;;  %s1306_s9 = smul.u32 280, %s2648_s8  ;;  %s2641_s6 = smov %s2648_s8 }
 0x157   : >> { %1250 = vst [vmem:[%s1818_s18 + $0x40] sm:$0xff] %v1249_v44  ;;  %v1255_v39 = vld [vmem:[%s1822_s24 + $0x58] sm:$0xff]  ;;  %1252 = vst [vmem:[%s1818_s18 + $0x48] sm:$0xff] %v1251_v19  ;;  %v1257_v26 = vld [vmem:[%s1822_s24 + $0x60] sm:$0xff] }
 0x158   : >> { %1254 = vst [vmem:[%s1818_s18 + $0x50] sm:$0xff] %v1253_v50  ;;  %1256 = vst [vmem:[%s1818_s18 + $0x58] sm:$0xff] %v1255_v39  ;;  %v1259_v59 = vld [vmem:[%s1822_s24 + $0x68] sm:$0xff]  ;;  %v1261_v1 = vld [vmem:[%s1822_s24 + $0x70] sm:$0xff]  ;;  %s2575_s10 = scalar_lea.vmem %s2294_s15, %s1306_s9 [#allocation2]   ;;  %s1309_s11 = scalar_lea.vmem %s2496_s30, %s1306_s9  }
 0x159   : >> { %1258 = vst [vmem:[%s1818_s18 + $0x60] sm:$0xff] %v1257_v26  ;;  %1260 = vst [vmem:[%s1818_s18 + $0x68] sm:$0xff] %v1259_v59  ;;  %v1263_v25 = vld [vmem:[%s1822_s24 + $0x78] sm:$0xff]  ;;  %v1265_v54 = vld [vmem:[%s1822_s24 + $0x80] sm:$0xff] }
 0x15a   : >> { %1262 = vst [vmem:[%s1818_s18 + $0x70] sm:$0xff] %v1261_v1  ;;  %v1267_v21 = vld [vmem:[%s1822_s24 + $0x88] sm:$0xff]  ;;  %1264 = vst [vmem:[%s1818_s18 + $0x78] sm:$0xff] %v1263_v25  ;;  %v1269_v62 = vld [vmem:[%s1822_s24 + $0x90] sm:$0xff] }
 0x15b   : >> { %1266 = vst [vmem:[%s1818_s18 + $0x80] sm:$0xff] %v1265_v54  ;;  %1268 = vst [vmem:[%s1818_s18 + $0x88] sm:$0xff] %v1267_v21  ;;  %v1271_v38 = vld [vmem:[%s1822_s24 + $0x98] sm:$0xff]  ;;  %v1273_v12 = vld [vmem:[%s1822_s24 + $0xa0] sm:$0xff] }
 0x15c   : >> { %1270 = vst [vmem:[%s1818_s18 + $0x90] sm:$0xff] %v1269_v62  ;;  %1272 = vst [vmem:[%s1818_s18 + $0x98] sm:$0xff] %v1271_v38  ;;  %v1275_v63 = vld [vmem:[%s1822_s24 + $0xa8] sm:$0xff]  ;;  %v1277_v11 = vld [vmem:[%s1822_s24 + $0xb0] sm:$0xff] }
 0x15d   : >> { %1274 = vst [vmem:[%s1818_s18 + $0xa0] sm:$0xff] %v1273_v12  ;;  %v1279_v52 = vld [vmem:[%s1822_s24 + $0xb8] sm:$0xff]  ;;  %1276 = vst [vmem:[%s1818_s18 + $0xa8] sm:$0xff] %v1275_v63  ;;  %v1281_v0 = vld [vmem:[%s1822_s24 + $0xc0] sm:$0xff] }
 0x15e   : >> { %1278 = vst [vmem:[%s1818_s18 + $0xb0] sm:$0xff] %v1277_v11  ;;  %1280 = vst [vmem:[%s1818_s18 + $0xb8] sm:$0xff] %v1279_v52  ;;  %v1283_v31 = vld [vmem:[%s1822_s24 + $0xc8] sm:$0xff]  ;;  %v1285_v9 = vld [vmem:[%s1822_s24 + $0xd0] sm:$0xff]  ;;  %1229 = sbr.rel (!%p1226_p12) target bundleno = 338 (0x152), region = 135 }
 0x15f   : >> { %1282 = vst [vmem:[%s1818_s18 + $0xc0] sm:$0xff] %v1281_v0  ;;  %1284 = vst [vmem:[%s1818_s18 + $0xc8] sm:$0xff] %v1283_v31  ;;  %v1287_v41 = vld [vmem:[%s1822_s24 + $0xd8] sm:$0xff]  ;;  %v1289_v61 = vld [vmem:[%s1822_s24 + $0xe0] sm:$0xff] }
 0x160   : >> { %1286 = vst [vmem:[%s1818_s18 + $0xd0] sm:$0xff] %v1285_v9  ;;  %v1291_v29 = vld [vmem:[%s1822_s24 + $0xe8] sm:$0xff]  ;;  %1288 = vst [vmem:[%s1818_s18 + $0xd8] sm:$0xff] %v1287_v41  ;;  %v1293_v23 = vld [vmem:[%s1822_s24 + $0xf0] sm:$0xff] }
 0x161   : >> { %1290 = vst [vmem:[%s1818_s18 + $0xe0] sm:$0xff] %v1289_v61  ;;  %1292 = vst [vmem:[%s1818_s18 + $0xe8] sm:$0xff] %v1291_v29  ;;  %v1295_v56 = vld [vmem:[%s1822_s24 + $0xf8] sm:$0xff]  ;;  %v1297_v10 = vld [vmem:[%s1822_s24 + $0x100] sm:$0xff] }
 0x162   : >> { %1294 = vst [vmem:[%s1818_s18 + $0xf0] sm:$0xff] %v1293_v23  ;;  %1296 = vst [vmem:[%s1818_s18 + $0xf8] sm:$0xff] %v1295_v56  ;;  %v1299_v20 = vld [vmem:[%s1822_s24 + $0x108] sm:$0xff]  ;;  %v1301_v16 = vld [vmem:[%s1822_s24 + $0x110] sm:$0xff]  ;;  %s2640_s24 = smov %s2575_s10 }
 0x163   : >> { %1298 = vst [vmem:[%s1818_s18 + $0x100] sm:$0xff] %v1297_v10  ;;  %1300 = vst [vmem:[%s1818_s18 + $0x108] sm:$0xff] %v1299_v20 }
 0x164   : >> { %1302 = vst [vmem:[%s1818_s18 + $0x110] sm:$0xff] %v1301_v16  ;;  %s2639_s18 = smov %s1309_s11 }
 0x165 PF: > { %1758 = sdivrem.u32 %s2646_s26, 35 }
 0x166   : > { %s1486_s12 = smul.u32 280, %s2502_s23 }
 0x168   : > { %s1314_s13 = scalar_lea.vmem %s2294_s15, %s1486_s12 [#allocation2]   ;;  %s1316_s14 = scalar_lea.vmem %s2496_s30, %s1486_s12  }
 0x16e   : > { %s1759_s17 = spop.drf %1758 }
 0x16f   : > { %p1488_p13 = scmp.le.s32.totalorder %s1759_s17, 0 }
 0x170   : > { %s1832_s20 = smov (!%p1488_p13), %s1316_s14   ;;  %s1836_s21 = smov (!%p1488_p13), %s1314_s13  }
 0x171   : > { %1425 = sbr.rel (%p1488_p13) target bundleno = 386 (0x182), region = 140  ;;  %s1840_s25 = smov (!%p1488_p13), 0  }
 0x172   : > { %s1844_s27 = smov (!%p1488_p13), 0  }
 0x178 LB: >> { %v1326_v40 = vld [vmem:[%s1838_s21] sm:$0xff]  ;;  %s1328_s28 = sadd.s32 1, %s1842_s25  ;;  %s1320_s27 = sadd.s32 1, %s1846_s27   ;;  %s1846_s27 = sphi %s1844_s27, %s1320_s27   ;;  %s1842_s25 = sphi %s1840_s25, %s1841_s25   ;;  %s1838_s21 = sphi %s1836_s21, %s1333_s21   ;;  %s1834_s20 = sphi %s1832_s20, %s1334_s20  }
 0x179   : >> { %1327 = vst [vmem:[%s1834_s20] sm:$0xff] %v1326_v40  ;;  %p1329_p0 = scmp.ge.s32.totalorder %s1328_s28, %s1759_s17  ;;  %p1319_p1 = scmp.ge.s32.totalorder %s1320_s27, %s1759_s17 }
 0x17b   : >> { %s2650_s28 = smov (%p1329_p0, %s1328_s28), 0  ;;  %1322 = sbr.rel (!%p1319_p1) target bundleno = 376 (0x178), region = 146 }
 0x17c   : >> { %s1489_s15 = sshll.u32 %s2650_s28, 3  ;;  %s1841_s25 = smov %s2650_s28  }
 0x17d   : >> { %s1333_s21 = scalar_lea.vmem %s1314_s13, %s1489_s15 [#allocation2]   ;;  %s1334_s20 = scalar_lea.vmem %s1316_s14, %s1489_s15  }
 0x182 PF: > { %p11_p2 = scmp.ge.s32.totalorder %s1891_s19, 6   ;;  %s2642_s15 = smov %s1810_s16 }
 0x183   : > { %s2643_s16 = smov %s1899_s22  ;;  %s2644_s17 = smov %s1891_s19 }
 0x184   :  { %13 = sbr.rel (!%p11_p2) target bundleno = 2 (0x2), region = 157 }

</bundles_post_ra>
